<compile_context>
chip_gen: v7x
topology: tpu7x:2x2x1
jax: 0.10.0
libtpu: 0.0.40
codegen_flags: <defaults>
</compile_context>

<pallas_src>
import functools
import math

import jax
import jax.numpy as jnp
import numpy as np
from jax import lax
from jax.experimental import pallas as pl
from jax.experimental.pallas import tpu as pltpu

_HAAR = 0.7071067811865476
_WAVELETS = {
    "haar": np.array([_HAAR, _HAAR], dtype=np.float32),
    "rearrange": np.array([1.0, 1.0], dtype=np.float32),
}


# ----------------------------- Pallas kernel ------------------------------ #
def _idwt_kernel(xll_ref, xlh_ref, xhl_ref, xhh_ref, pq_ref, ef_ref, out_ref):
    """One inverse-haar level on one (th, tw) input tile of one output channel."""
    f32 = jnp.float32
    xll = xll_ref[0, 0].astype(f32)
    xlh = xlh_ref[0, 0].astype(f32)
    xhl = xhl_ref[0, 0].astype(f32)
    xhh = xhh_ref[0, 0].astype(f32)

    # Row (H) butterfly -> even/odd output-row contributions.  Pure VPU add/sub:
    # the 1/sqrt(2) taps and the rescale are folded into the pq matrices below.
    yl_even = xll + xlh
    yl_odd = xll - xlh
    yh_even = xhl + xhh
    yh_odd = xhl - xhh

    dot = functools.partial(
        jnp.dot,
        precision=lax.Precision.HIGHEST,        # keep f32 accuracy on the MXU
        preferred_element_type=f32,
    )

    # Column (W) butterfly + column interleave on the MXU:
    #   P[j, 2j] = P[j, 2j+1] = s ;  Q[j, 2j] = s, Q[j, 2j+1] = -s
    p_mat = pq_ref[0]
    q_mat = pq_ref[1]
    o_even = dot(yl_even, p_mat) + dot(yh_even, q_mat)   # (th, 2*tw) even rows
    o_odd = dot(yl_odd, p_mat) + dot(yh_odd, q_mat)      # (th, 2*tw) odd rows

    # Row interleave on the MXU:  E[2i, i] = 1, F[2i+1, i] = 1.
    e_mat = ef_ref[0]
    f_mat = ef_ref[1]
    out_ref[0, 0] = (dot(e_mat, o_even) + dot(f_mat, o_odd)).astype(out_ref.dtype)


# ------------------------------ wrapper ----------------------------------- #
def _pick_tile(dim, unit, cap):
    """Largest multiple of `unit` that divides `dim` and is <= cap, else dim."""
    if dim <= cap:
        return dim
    best = 0
    t = unit
    while t <= cap:
        if dim % t == 0:
            best = t
        t += unit
    return best if best > 0 else dim


def _interleave_mats(th, tw, scale):
    """Constant MXU selection/interleave matrices (built host-side in numpy)."""
    j = np.arange(tw)
    p = np.zeros((tw, 2 * tw), np.float32)
    q = np.zeros((tw, 2 * tw), np.float32)
    p[j, 2 * j] = scale
    p[j, 2 * j + 1] = scale
    q[j, 2 * j] = scale
    q[j, 2 * j + 1] = -scale

    i = np.arange(th)
    e = np.zeros((2 * th, th), np.float32)
    f = np.zeros((2 * th, th), np.float32)
    e[2 * i, i] = 1.0
    f[2 * i + 1, i] = 1.0
    return jnp.asarray(np.stack([p, q])), jnp.asarray(np.stack([e, f]))


def _idwt_pallas(x, rescale=True):
    """One inverse haar-DWT level: (B, 4C, H, W) -> (B, C, 2H, 2W)."""
    B, C4, H, W = x.shape
    assert C4 % 4 == 0, "input channels must be a multiple of 4"
    C = C4 // 4

    # Tile sizes: input lane dim tw (output lane dim = 2*tw), input sublane th.
    # Capped so the MXU interleave stays cheap and per-step VMEM stays small.
    th = _pick_tile(H, 8, 64)
    tw = _pick_tile(W, 128, 128)
    nh, nw = H // th, W // tw

    a = float(_WAVELETS["haar"][0])
    scale = 2.0 * a * a if rescale else a * a
    pq, ef = _interleave_mats(th, tw, scale)

    def chunk_spec(k):
        # k-th channel chunk of x (xll/xlh/xhl/xhh live at channel offset k*C).
        return pl.BlockSpec(
            (1, 1, th, tw), lambda b, c, i, j, k=k: (b, c + k * C, i, j))

    const_pq_spec = pl.BlockSpec((2, tw, 2 * tw), lambda b, c, i, j: (0, 0, 0))
    const_ef_spec = pl.BlockSpec((2, 2 * th, th), lambda b, c, i, j: (0, 0, 0))
    out_spec = pl.BlockSpec(
        (1, 1, 2 * th, 2 * tw), lambda b, c, i, j: (b, c, i, j))

    itemsize = x.dtype.itemsize
    cost = pl.CostEstimate(
        flops=int(x.size) * int(4 + 4 * tw + 8 * th),
        transcendentals=0,
        bytes_accessed=int(2 * x.size * itemsize) + int(pq.size * 4) + int(ef.size * 4),
    )

    return pl.pallas_call(
        _idwt_kernel,
        out_shape=jax.ShapeDtypeStruct((B, C, 2 * H, 2 * W), x.dtype),
        grid=(B, C, nh, nw),
        in_specs=[chunk_spec(0), chunk_spec(1), chunk_spec(2), chunk_spec(3),
                  const_pq_spec, const_ef_spec],
        out_specs=out_spec,
        compiler_params=pltpu.CompilerParams(
            dimension_semantics=("parallel", "parallel", "parallel", "parallel")),
        cost_estimate=cost,
    )(x, x, x, x, pq, ef)


# ---------------------------- UnPatcher module ----------------------------- #
class UnPatcherPallas:
    """JAX/Pallas port of cosmos_tokenizer UnPatcher (forward only)."""

    def __init__(self, patch_size=1, patch_method="haar"):
        self.patch_size = patch_size
        self.patch_method = patch_method
        self.wavelets = jnp.asarray(_WAVELETS[patch_method])   # parity buffers
        self._arange = jnp.arange(_WAVELETS[patch_method].shape[0])
        self.levels = int(math.log2(patch_size))

    def __call__(self, x):
        if self.patch_method == "haar":
            for _ in range(self.levels):
                x = _idwt_pallas(x, rescale=True)
            return x
        elif self.patch_method == "rearrange":
            # 'b (c p1 p2) h w -> b c (h p1) (w p2)'  (pure layout, no kernel)
            B, C4, H, W = x.shape
            p = self.patch_size
            c = C4 // (p * p)
            x = x.reshape(B, c, p, p, H, W)
            x = jnp.transpose(x, (0, 1, 4, 2, 5, 3))
            return x.reshape(B, c, H * p, W * p)
        else:
            raise ValueError("Unknown patch method: " + self.patch_method)


# --------------------------- pure-JAX reference ---------------------------- #
def _idwt_ref(x, rescale=True):
    """Direct transcription of the torch _idwt using XLA convolutions."""
    dtype = x.dtype
    h = jnp.asarray(_WAVELETS["haar"], dtype=dtype)
    n = h.shape[0]
    g = x.shape[1] // 4
    hl = jnp.tile(jnp.flip(h).reshape(1, 1, -1), (g, 1, 1))
    hh = jnp.tile((h * ((-1.0) ** jnp.arange(n))).reshape(1, 1, -1),
                  (g, 1, 1)).astype(dtype)
    xll, xlh, xhl, xhh = jnp.split(x, 4, axis=1)

    def conv_t(inp, w, stride):
        # conv_transpose2d(..., stride, padding=n-2=0, groups=g) written as a
        # lhs-dilated forward conv with the kernel spatially flipped.
        kh, kw = w.shape[2], w.shape[3]
        return lax.conv_general_dilated(
            inp, jnp.flip(w, axis=(2, 3)),
            window_strides=(1, 1),
            padding=((kh - 1, kh - 1), (kw - 1, kw - 1)),
            lhs_dilation=stride,
            dimension_numbers=("NCHW", "OIHW", "NCHW"),
            feature_group_count=g)

    yl = conv_t(xll, hl[:, :, :, None], (2, 1)) + conv_t(xlh, hh[:, :, :, None], (2, 1))
    yh = conv_t(xhl, hl[:, :, :, None], (2, 1)) + conv_t(xhh, hh[:, :, :, None], (2, 1))
    y = conv_t(yl, hl[:, :, None, :], (1, 2)) + conv_t(yh, hh[:, :, None, :], (1, 2))
    if rescale:
        y = y * 2
    return y


def _ihaar_ref(x, levels):
    for _ in range(levels):
        x = _idwt_ref(x, rescale=True)
    return x


if __name__ == "__main__":
    key = jax.random.PRNGKey(0)
    patch_size = 4                          # two inverse-haar levels
    B, C, Hs, Ws = 2, 4, 4, 4               # latent (B, C*p*p, 4, 4) -> (B, C, 16, 16)
    x = jax.random.normal(
        key, (B, C * patch_size * patch_size, Hs, Ws), dtype=jnp.float32)

    unpatcher = UnPatcherPallas(patch_size=patch_size, patch_method="haar")
    out = jax.block_until_ready(unpatcher(x))
    ref = jax.block_until_ready(_ihaar_ref(x, unpatcher.levels))

    assert out.shape == (B, C, Hs * patch_size, Ws * patch_size), out.shape
    assert out.dtype == x.dtype
    np.testing.assert_allclose(np.asarray(out), np.asarray(ref), rtol=1e-5, atol=1e-5)

    # Also exercise the tiled multi-step grid path (th < H, tw < W).
    x2 = jax.random.normal(jax.random.PRNGKey(1), (1, 8, 96, 256), dtype=jnp.float32)
    out2 = jax.block_until_ready(_idwt_pallas(x2, rescale=True))
    ref2 = jax.block_until_ready(_idwt_ref(x2, rescale=True))
    np.testing.assert_allclose(np.asarray(out2), np.asarray(ref2), rtol=1e-5, atol=1e-5)

    print("KERNEL_OK")
</pallas_src>

<mosaic_0001>
module attributes {stable_mosaic.version = 11 : i64} {
  func.func @_idwt_kernel(%arg0: i32, %arg1: i32, %arg2: i32, %arg3: i32, %arg4: memref<1x1x4x4xf32, #tpu.memory_space<vmem>>, %arg5: memref<1x1x4x4xf32, #tpu.memory_space<vmem>>, %arg6: memref<1x1x4x4xf32, #tpu.memory_space<vmem>>, %arg7: memref<1x1x4x4xf32, #tpu.memory_space<vmem>>, %arg8: memref<2x4x8xf32, #tpu.memory_space<vmem>>, %arg9: memref<2x8x4xf32, #tpu.memory_space<vmem>>, %arg10: memref<1x1x8x8xf32, #tpu.memory_space<vmem>>) attributes {dimension_semantics = [#tpu.dimension_semantics<parallel>, #tpu.dimension_semantics<parallel>, #tpu.dimension_semantics<parallel>, #tpu.dimension_semantics<parallel>], iteration_bounds = array<i64: 2, 16, 1, 1>, scalar_prefetch = 0 : i64, scratch_operands = 0 : i64, tpu.core_type = #tpu.core_type<tc>, window_params = [{transform_indices = @transform_0, window_bounds = array<i64: 1, 1, 4, 4>}, {transform_indices = @transform_1, window_bounds = array<i64: 1, 1, 4, 4>}, {transform_indices = @transform_2, window_bounds = array<i64: 1, 1, 4, 4>}, {transform_indices = @transform_3, window_bounds = array<i64: 1, 1, 4, 4>}, {pipeline_mode = #tpu.pipeline_mode<synchronous>, transform_indices = @transform_4, window_bounds = array<i64: 2, 4, 8>}, {pipeline_mode = #tpu.pipeline_mode<synchronous>, transform_indices = @transform_5, window_bounds = array<i64: 2, 8, 4>}, {transform_indices = @transform_6, window_bounds = array<i64: 1, 1, 8, 8>}]} {
    %c0 = arith.constant 0 : index
    %c0_0 = arith.constant 0 : index
    %c0_1 = arith.constant 0 : index
    %c0_2 = arith.constant 0 : index
    %0 = vector.load %arg4[%c0, %c0_0, %c0_1, %c0_2] : memref<1x1x4x4xf32, #tpu.memory_space<vmem>>, vector<1x1x4x4xf32>
    %1 = vector.shape_cast %0 : vector<1x1x4x4xf32> to vector<4x4xf32>
    %c0_3 = arith.constant 0 : index
    %c0_4 = arith.constant 0 : index
    %c0_5 = arith.constant 0 : index
    %c0_6 = arith.constant 0 : index
    %2 = vector.load %arg5[%c0_3, %c0_4, %c0_5, %c0_6] : memref<1x1x4x4xf32, #tpu.memory_space<vmem>>, vector<1x1x4x4xf32>
    %3 = vector.shape_cast %2 : vector<1x1x4x4xf32> to vector<4x4xf32>
    %c0_7 = arith.constant 0 : index
    %c0_8 = arith.constant 0 : index
    %c0_9 = arith.constant 0 : index
    %c0_10 = arith.constant 0 : index
    %4 = vector.load %arg6[%c0_7, %c0_8, %c0_9, %c0_10] : memref<1x1x4x4xf32, #tpu.memory_space<vmem>>, vector<1x1x4x4xf32>
    %5 = vector.shape_cast %4 : vector<1x1x4x4xf32> to vector<4x4xf32>
    %c0_11 = arith.constant 0 : index
    %c0_12 = arith.constant 0 : index
    %c0_13 = arith.constant 0 : index
    %c0_14 = arith.constant 0 : index
    %6 = vector.load %arg7[%c0_11, %c0_12, %c0_13, %c0_14] : memref<1x1x4x4xf32, #tpu.memory_space<vmem>>, vector<1x1x4x4xf32>
    %7 = vector.shape_cast %6 : vector<1x1x4x4xf32> to vector<4x4xf32>
    %8 = arith.addf %1, %3 : vector<4x4xf32>
    %9 = arith.subf %1, %3 : vector<4x4xf32>
    %10 = arith.addf %5, %7 : vector<4x4xf32>
    %11 = arith.subf %5, %7 : vector<4x4xf32>
    %c0_15 = arith.constant 0 : index
    %c0_16 = arith.constant 0 : index
    %c0_17 = arith.constant 0 : index
    %12 = vector.load %arg8[%c0_15, %c0_16, %c0_17] : memref<2x4x8xf32, #tpu.memory_space<vmem>>, vector<1x4x8xf32>
    %13 = vector.shape_cast %12 : vector<1x4x8xf32> to vector<4x8xf32>
    %c1 = arith.constant 1 : index
    %c0_18 = arith.constant 0 : index
    %c0_19 = arith.constant 0 : index
    %14 = vector.load %arg8[%c1, %c0_18, %c0_19] : memref<2x4x8xf32, #tpu.memory_space<vmem>>, vector<1x4x8xf32>
    %15 = vector.shape_cast %14 : vector<1x4x8xf32> to vector<4x8xf32>
    %cst = arith.constant dense<0.000000e+00> : vector<4x8xf32>
    %16 = tpu.matmul %8, %13, %cst {dimension_numbers = #tpu.dot_dimension_numbers<[1], [0], [0], [1], [0, 0, 1, 1], [], []>, precision = #tpu.contract_precision<fp32>} : vector<4x4xf32>, vector<4x8xf32>, vector<4x8xf32> -> vector<4x8xf32>
    %cst_20 = arith.constant dense<0.000000e+00> : vector<4x8xf32>
    %17 = tpu.matmul %10, %15, %cst_20 {dimension_numbers = #tpu.dot_dimension_numbers<[1], [0], [0], [1], [0, 0, 1, 1], [], []>, precision = #tpu.contract_precision<fp32>} : vector<4x4xf32>, vector<4x8xf32>, vector<4x8xf32> -> vector<4x8xf32>
    %18 = arith.addf %16, %17 : vector<4x8xf32>
    %cst_21 = arith.constant dense<0.000000e+00> : vector<4x8xf32>
    %19 = tpu.matmul %9, %13, %cst_21 {dimension_numbers = #tpu.dot_dimension_numbers<[1], [0], [0], [1], [0, 0, 1, 1], [], []>, precision = #tpu.contract_precision<fp32>} : vector<4x4xf32>, vector<4x8xf32>, vector<4x8xf32> -> vector<4x8xf32>
    %cst_22 = arith.constant dense<0.000000e+00> : vector<4x8xf32>
    %20 = tpu.matmul %11, %15, %cst_22 {dimension_numbers = #tpu.dot_dimension_numbers<[1], [0], [0], [1], [0, 0, 1, 1], [], []>, precision = #tpu.contract_precision<fp32>} : vector<4x4xf32>, vector<4x8xf32>, vector<4x8xf32> -> vector<4x8xf32>
    %21 = arith.addf %19, %20 : vector<4x8xf32>
    %c0_23 = arith.constant 0 : index
    %c0_24 = arith.constant 0 : index
    %c0_25 = arith.constant 0 : index
    %22 = vector.load %arg9[%c0_23, %c0_24, %c0_25] : memref<2x8x4xf32, #tpu.memory_space<vmem>>, vector<1x8x4xf32>
    %23 = vector.shape_cast %22 : vector<1x8x4xf32> to vector<8x4xf32>
    %c1_26 = arith.constant 1 : index
    %c0_27 = arith.constant 0 : index
    %c0_28 = arith.constant 0 : index
    %24 = vector.load %arg9[%c1_26, %c0_27, %c0_28] : memref<2x8x4xf32, #tpu.memory_space<vmem>>, vector<1x8x4xf32>
    %25 = vector.shape_cast %24 : vector<1x8x4xf32> to vector<8x4xf32>
    %cst_29 = arith.constant dense<0.000000e+00> : vector<8x8xf32>
    %26 = tpu.matmul %23, %18, %cst_29 {dimension_numbers = #tpu.dot_dimension_numbers<[1], [0], [0], [1], [0, 0, 1, 1], [], []>, precision = #tpu.contract_precision<fp32>} : vector<8x4xf32>, vector<4x8xf32>, vector<8x8xf32> -> vector<8x8xf32>
    %cst_30 = arith.constant dense<0.000000e+00> : vector<8x8xf32>
    %27 = tpu.matmul %25, %21, %cst_30 {dimension_numbers = #tpu.dot_dimension_numbers<[1], [0], [0], [1], [0, 0, 1, 1], [], []>, precision = #tpu.contract_precision<fp32>} : vector<8x4xf32>, vector<4x8xf32>, vector<8x8xf32> -> vector<8x8xf32>
    %28 = arith.addf %26, %27 : vector<8x8xf32>
    %c0_31 = arith.constant 0 : index
    %c0_32 = arith.constant 0 : index
    %c0_33 = arith.constant 0 : index
    %c0_34 = arith.constant 0 : index
    %29 = vector.load %arg10[%c0_31, %c0_32, %c0_33, %c0_34] : memref<1x1x8x8xf32, #tpu.memory_space<vmem>>, vector<1x1x8x8xf32>
    %30 = vector.shape_cast %29 : vector<1x1x8x8xf32> to vector<8x8xf32>
    %31 = vector.shape_cast %28 : vector<8x8xf32> to vector<1x1x8x8xf32>
    tpu.vector_store %arg10[%c0_31, %c0_32, %c0_33, %c0_34], %31 {strides = array<i32>} : memref<1x1x8x8xf32, #tpu.memory_space<vmem>>, vector<1x1x8x8xf32>,
    return
  }
  func.func @transform_0(%arg0: i32, %arg1: i32, %arg2: i32, %arg3: i32) -> (i32, i32, i32, i32) {
    %c0_i32 = arith.constant 0 : i32
    %0 = arith.addi %arg1, %c0_i32 : i32
    %c0_i32_0 = arith.constant 0 : i32
    return %arg0, %0, %arg2, %arg3 : i32, i32, i32, i32
  }
  func.func @transform_1(%arg0: i32, %arg1: i32, %arg2: i32, %arg3: i32) -> (i32, i32, i32, i32) {
    %c16_i32 = arith.constant 16 : i32
    %0 = arith.addi %arg1, %c16_i32 : i32
    %c0_i32 = arith.constant 0 : i32
    return %arg0, %0, %arg2, %arg3 : i32, i32, i32, i32
  }
  func.func @transform_2(%arg0: i32, %arg1: i32, %arg2: i32, %arg3: i32) -> (i32, i32, i32, i32) {
    %c32_i32 = arith.constant 32 : i32
    %0 = arith.addi %arg1, %c32_i32 : i32
    %c0_i32 = arith.constant 0 : i32
    return %arg0, %0, %arg2, %arg3 : i32, i32, i32, i32
  }
  func.func @transform_3(%arg0: i32, %arg1: i32, %arg2: i32, %arg3: i32) -> (i32, i32, i32, i32) {
    %c48_i32 = arith.constant 48 : i32
    %0 = arith.addi %arg1, %c48_i32 : i32
    %c0_i32 = arith.constant 0 : i32
    return %arg0, %0, %arg2, %arg3 : i32, i32, i32, i32
  }
  func.func @transform_4(%arg0: i32, %arg1: i32, %arg2: i32, %arg3: i32) -> (i32, i32, i32) {
    %c0_i32 = arith.constant 0 : i32
    %c0_i32_0 = arith.constant 0 : i32
    %c0_i32_1 = arith.constant 0 : i32
    %c0_i32_2 = arith.constant 0 : i32
    return %c0_i32, %c0_i32_0, %c0_i32_1 : i32, i32, i32
  }
  func.func @transform_5(%arg0: i32, %arg1: i32, %arg2: i32, %arg3: i32) -> (i32, i32, i32) {
    %c0_i32 = arith.constant 0 : i32
    %c0_i32_0 = arith.constant 0 : i32
    %c0_i32_1 = arith.constant 0 : i32
    %c0_i32_2 = arith.constant 0 : i32
    return %c0_i32, %c0_i32_0, %c0_i32_1 : i32, i32, i32
  }
  func.func @transform_6(%arg0: i32, %arg1: i32, %arg2: i32, %arg3: i32) -> (i32, i32, i32, i32) {
    %c0_i32 = arith.constant 0 : i32
    return %arg0, %arg1, %arg2, %arg3 : i32, i32, i32, i32
  }
}

</mosaic_0001>

<bundles_post_ra>
// kernel: tpu_custom_call.1
= control target key start
LH: loop header
LB: loop body
LE: loop exit
PB: predicated region body
PF: predicated region fallthrough
CT: control target
= control target key end

     0   :  { %s3884_s21 = smov 0   ;;  %s3886_s22 = smov 0   ;;  %s4166_s0 = inlined_call_operand.vmem [shape: f32[2,64,4,4], index: 0, kind: input, shape index: {}]   ;;  %s4167_s1 = inlined_call_operand.vmem [shape: f32[2,64,4,4], index: 1, kind: input, shape index: {}]   ;;  %s4168_s2 = inlined_call_operand.vmem [shape: f32[2,64,4,4], index: 2, kind: input, shape index: {}]   ;;  %s4169_s3 = inlined_call_operand.vmem [shape: f32[2,64,4,4], index: 3, kind: input, shape index: {}]   ;;  %s4170_s4 = inlined_call_operand.vmem [shape: f32[2,4,8], index: 4, kind: input, shape index: {}]   ;;  %s4171_s5 = inlined_call_operand.vmem [shape: f32[2,8,4], index: 5, kind: input, shape index: {}]   ;;  %s4172_s6 = inlined_call_operand.vmem [shape: f32[2,16,8,8], index: 6, kind: output, shape index: {}]  }
   0x1   :  { %s3888_s23 = smov 0   ;;  %s3890_s24 = smov 0  }
   0x2   :  { %s3892_s25 = smov 0  }
   0x3 LB: > { %s38_s26 = sadd.s32 1, %s3837_s23  ;;  %s42_s27 = sadd.s32 1, %s3841_s24  ;;  %s3845_s25 = sphi %s3892_s25, %s16_s25   ;;  %s3841_s24 = sphi %s3890_s24, %s4176_s24   ;;  %s3837_s23 = sphi %s3888_s23, %s4175_s23   ;;  %s3833_s22 = sphi %s3886_s22, %s4174_s22   ;;  %s3829_s21 = sphi %s3884_s21, %s4173_s21  }
   0x4   : > { %p40_p0 = scmp.ge.s32.totalorder %s38_s26, 16  ;;  %p3433_p1 = scmp.ge.s32.totalorder %s3845_s25, 1 }
   0x5   : > { %p346_p2 = scmp.lt.s32.totalorder %s3845_s25, 33 }
   0x6   : > { %s4178_s26 = smov (%p40_p0, %s38_s26), 0  ;;  %s4180_s27 = smov (!%p40_p0, %s42_s27), %s3841_s24 }
   0x7   : > { %p347_p3 = pnand %p3433_p1, %p346_p2  ;;  %p44_p4 = scmp.ge.s32.totalorder %s4180_s27, 2 }
   0x8   : > { %v3444_v0 = vld [vmem:[%s4170_s4 + $0x4] sm:$0xf] (!%p347_p3)  ;;  %vm530_vm0 = vcmask (!%p347_p3), 1043456   ;;  %p439_p5 = scmp.lt.s32.totalorder (!%p347_p3), %s3833_s22, 1  ;;  %v3847_v1 = vmov (!%p347_p3), 0.0   ;;  %s469_s8 = sadd.s32 (!%p347_p3), 32, %s3829_s21 }
   0x9   : > { %s4182_s27 = smov (%p44_p4, %s4180_s27), 0  ;;  %350 = sbr.rel (%p347_p3) target bundleno = 685 (0x2ad), region = 44 }
   0xa   : > { %3520 = vmatprep.subr.mxu1 (!%p347_p3), %v3847_v1  ;;  %3550 = vmatprep.subr.mxu0 (!%p347_p3), %v3847_v1  ;;  %v532_v2 = vsel (!%p347_p3), %vm530_vm0, %v3444_v0, 0  ;;  %v523_v3 = vld [vmem:[%s4170_s4] sm:$0xf] (!%p347_p3)  ;;  %s485_s9 = sadd.s32 (!%p347_p3), 48, %s3829_s21  ;;  %vm3848_vm1 = vmmov (!%p347_p3), 0   ;;  %p472_p6 = scmp.lt.s32.totalorder (!%p347_p3), %s469_s8, 63 }
   0xb   : > { %v3930_v4 = vand.u32 (!%p347_p3), 4294901760, %v532_v2  ;;  %3522 = vmatprep.mubr.msk.f32.mxu1 (!%p347_p3), %vm3848_vm1, %v3847_v1  ;;  %v984_v5 = vsel (!%p347_p3), %vm530_vm0, %v523_v3, 0  ;;  %3552 = vmatprep.mubr.msk.f32.mxu0 (!%p347_p3), %vm3848_vm1, %v3847_v1  ;;  %p488_p7 = scmp.lt.s32.totalorder (!%p347_p3), %s485_s9, 63  ;;  %p441_p8 = scmp.lt.s32.totalorder (!%p347_p3), %s3829_s21, 63  ;;  %vm526_vm2 = vcmask (!%p347_p3), 31744   ;;  %v3445_v52 = vld [vmem:[%s4171_s5 + $0x8] sm:$0xff] (!%p347_p3) }
   0xc   : > { %v3940_v6 = vand.u32 (!%p347_p3), 4294901760, %v984_v5  ;;  %s453_s12 = sadd.s32 (!%p347_p3), 16, %s3829_s21  ;;  %v2334_v53 = vsel (!%p347_p3), %vm526_vm2, %v3445_v52, 0  ;;  %p503_p10 = scmp.lt.s32.totalorder (!%p347_p3), %s3829_s21, 15  ;;  %vm3237_vm3 = vcmask (!%p347_p3), 64512  }
   0xd   : > { %3521 = vmatpush3.msra.mxu1 (!%p347_p3), %v3930_v4  ;;  %p456_p9 = scmp.lt.s32.totalorder (!%p347_p3), %s453_s12, 63  ;;  %v3960_v8 = vsub.f32 (!%p347_p3), %v532_v2, %v3930_v4  ;;  %v2405_v54 = vand.u32 (!%p347_p3), 4294901760, %v2334_v53 }
   0xe   : > { %3551 = vmatpush3.msra.mxu0 (!%p347_p3), %v3940_v6  ;;  %3525 = vmatprep.subr.mxu1 (!%p347_p3), %v3847_v1  ;;  %v3982_v15 = vsub.f32 (!%p347_p3), %v984_v5, %v3940_v6 }
   0xf   : > { %3555 = vmatprep.subr.mxu0 (!%p347_p3), %v3847_v1  ;;  %v3969_v12 = vand.u32 (!%p347_p3), 4294901760, %v3960_v8  ;;  %v2406_v55 = vsub.f32 (!%p347_p3), %v2334_v53, %v2405_v54 }
  0x10   : > { %s4184_s22 = smov (!%p439_p5, %s3833_s22), 1  ;;  %s4186_s8 = smov (!%p472_p6, %s469_s8), 63  ;;  %v3995_v23 = vand.u32 4294901760, %v3982_v15 }
  0x11   : > { %s3944_s10 = sshll.u32 %s4184_s22, 6  ;;  %s4188_s9 = smov (!%p488_p7, %s485_s9), 63  ;;  %v614_v20 = vsub.f32 %v3960_v8, %v3969_v12  ;;  %v2407_v56 = vand.u32 4294901760, %v2406_v55 }
  0x12   : > { %s481_s11 = sadd.s32 %s3944_s10, %s4186_s8  ;;  %s497_s14 = sadd.s32 %s3944_s10, %s4188_s9  ;;  %v1066_v29 = vsub.f32 %v3982_v15, %v3995_v23 }
  0x13   : > { %s3439_s13 = sshll.u32 %s481_s11, 2  ;;  %s3441_s18 = sshll.u32 %s497_s14, 2  ;;  %v615_v26 = vand.u32 4294901760, %v614_v20  ;;  %v2408_v57 = vsub.f32 %v2406_v55, %v2407_v56 }
  0x14   : > { %s483_s17 = scalar_lea.vmem %s4168_s2, %s3439_s13  ;;  %s499_s28 = scalar_lea.vmem %s4169_s3, %s3441_s18  ;;  %v4005_v32 = vand.u32 4294901760, %v1066_v29 }
  0x15   : > { %v517_v7 = vld [vmem:[%s483_s17] sm:$0xf]  ;;  %s442_s29 = scalar_select %p441_p8, %s3829_s21, 63  ;;  %v2409_v61 = vand.u32 4294901760, %v2408_v57 }
  0x16   : > { %v518_v9 = vld [vmem:[%s499_s28] sm:$0xf]  ;;  %s4190_s12 = smov (!%p456_p9, %s453_s12), 63  ;;  %s4192_s21 = smov (!%p503_p10, %s3829_s21), 15 }
  0x17   : > { %v521_v10 = vadd.f32 %v518_v9, %v517_v7  ;;  %s450_s30 = sadd.s32 %s3944_s10, %s442_s29  ;;  %s465_s8 = sadd.s32 %s3944_s10, %s4190_s12  ;;  %v522_v34 = vsub.f32 %v517_v7, %v518_v9 }
  0x18   : > { %s3435_s7 = sshll.u32 %s450_s30, 2  ;;  %s3437_s14 = sshll.u32 %s465_s8, 2 }
  0x19   : > { %v528_v11 = vsel %vm526_vm2, %v521_v10, 0  ;;  %s452_s13 = scalar_lea.vmem %s4166_s0, %s3435_s7  ;;  %s467_s17 = scalar_lea.vmem %s4167_s1, %s3437_s14  ;;  %v1433_v35 = vsel %vm526_vm2, %v522_v34, 0 }
  0x1a   : > { %v3971_v13 = vand.u32 4294901760, %v528_v11  ;;  %v3979_v14 = vld [vmem:[%s452_s13] sm:$0xf]  ;;  %v1501_v36 = vand.u32 4294901760, %v1433_v35  ;;  %s3442_s20 = sshll.u32 %s4184_s22, 4 }
  0x1b   : > { %v3985_v17 = vld [vmem:[%s467_s17] sm:$0xf]  ;;  %s512_s28 = sadd.s32 %s3442_s20, %s4192_s21 }
  0x1c   : > { %v601_v16 = vsub.f32 %v528_v11, %v3971_v13  ;;  %v519_v18 = vadd.f32 %v3985_v17, %v3979_v14  ;;  %v520_v19 = vsub.f32 %v3979_v14, %v3985_v17  ;;  %v1502_v37 = vsub.f32 %v1433_v35, %v1501_v36  ;;  %s3443_s29 = sshll.u32 %s512_s28, 3 }
  0x1d   : > { %s514_s8 = scalar_lea.vmem %s4172_s6, %s3443_s29 }
  0x1e   : > { %v602_v21 = vand.u32 4294901760, %v601_v16  ;;  %v981_v22 = vsel %vm526_vm2, %v519_v18, 0  ;;  %v1503_v38 = vand.u32 4294901760, %v1502_v37  ;;  %v1882_v41 = vsel %vm526_vm2, %v520_v19, 0 }
  0x1f   : > { %v3997_v25 = vand.u32 4294901760, %v981_v22  ;;  %v1950_v42 = vand.u32 4294901760, %v1882_v41 }
  0x20   : > { %v603_v24 = vsub.f32 %v601_v16, %v602_v21  ;;  %v1504_v39 = vsub.f32 %v1502_v37, %v1503_v38 }
  0x21   : > { %v1053_v28 = vsub.f32 %v981_v22, %v3997_v25  ;;  %v1951_v43 = vsub.f32 %v1882_v41, %v1950_v42 }
  0x22   : > { %v604_v27 = vand.u32 4294901760, %v603_v24  ;;  %v1505_v40 = vand.u32 4294901760, %v1504_v39 }
  0x23   : > { %v1054_v30 = vand.u32 4294901760, %v1053_v28  ;;  %v1952_v44 = vand.u32 4294901760, %v1951_v43 }
  0x24   : > { %3523 = vmatmul.mubr.f32.vlgmr.msra.gmra.mrb[0].mxu1 %v604_v27 }
  0x25   : > { %3526 = vmatpush3.msra.mxu1 %v615_v26  ;;  %3527 = vmatprep.mubr.msk.f32.mxu1 %vm3848_vm1, %v3847_v1  ;;  %v1055_v31 = vsub.f32 %v1053_v28, %v1054_v30  ;;  %v1953_v45 = vsub.f32 %v1951_v43, %v1952_v44 }
  0x26   : > { %3530 = vmatprep.subr.mxu1 %v3847_v1 }
  0x27   : > { %v1056_v33 = vand.u32 4294901760, %v1055_v31  ;;  %v1954_v46 = vand.u32 4294901760, %v1953_v45 }
  0x29   : > { %3553 = vmatmul.mubr.f32.vlgmr.msra.gmra.mrb[0].mxu0 %v1056_v33 }
  0x2a   : > { %3556 = vmatpush3.msra.mxu0 %v4005_v32  ;;  %3557 = vmatprep.mubr.msk.f32.mxu0 %vm3848_vm1, %v3847_v1 }
  0x2b   : > { %3560 = vmatprep.subr.mxu0 %v3847_v1 }
  0x2c   : > { %3528 = vmatmul.mubr.f32.vlgmr.msra.gmra.mrb[0].mxu1 %v3971_v13 }
  0x2d   : > { %3531 = vmatpush3.msra.mxu1 %v3960_v8  ;;  %3532 = vmatprep.mubr.msk.f32.mxu1 %vm3848_vm1, %v3847_v1 }
  0x2e   : > { %3535 = vmatprep.subr.mxu1 %v3847_v1 }
  0x31   : > { %3558 = vmatmul.mubr.f32.vlgmr.msra.gmra.mrb[0].mxu0 %v3997_v25 }
  0x32   : > { %3561 = vmatpush3.msra.mxu0 %v3982_v15  ;;  %3562 = vmatprep.mubr.msk.f32.mxu0 %vm3848_vm1, %v3847_v1 }
  0x33   : > { %3565 = vmatprep.subr.mxu0 %v3847_v1 }
  0x34   : > { %3533 = vmatmul.mubr.f32.vlgmr.msra.gmra.mrb[0].mxu1 %v601_v16 }
  0x35   : > { %3536 = vmatpush3.msra.mxu1 %v3930_v4  ;;  %3537 = vmatprep.mubr.msk.f32.mxu1 %vm3848_vm1, %v3847_v1 }
  0x36   : > { %3540 = vmatprep.subr.mxu1 %v3847_v1 }
  0x39   : > { %3563 = vmatmul.mubr.f32.vlgmr.msra.gmra.mrb[0].mxu0 %v1053_v28 }
  0x3a   : > { %3566 = vmatpush3.msra.mxu0 %v3940_v6  ;;  %3567 = vmatprep.mubr.msk.f32.mxu0 %vm3848_vm1, %v3847_v1 }
  0x3b   : > { %3570 = vmatprep.subr.mxu0 %v3847_v1 }
  0x3c   : > { %3538 = vmatmul.mubr.f32.vlgmr.msra.gmra.mrb[0].mxu1 %v602_v21 }
  0x3d   : > { %3541 = vmatpush3.msra.mxu1 %v3969_v12  ;;  %3542 = vmatprep.mubr.msk.f32.mxu1 %vm3848_vm1, %v3847_v1 }
  0x3e   : > { %3545 = vmatprep.subr.mxu1 %v3847_v1 }
  0x41   : > { %3568 = vmatmul.mubr.f32.vlgmr.msra.gmra.mrb[0].mxu0 %v1054_v30 }
  0x42   : > { %3571 = vmatpush3.msra.mxu0 %v3995_v23  ;;  %3572 = vmatprep.mubr.msk.f32.mxu0 %vm3848_vm1, %v3847_v1 }
  0x43   : > { %3575 = vmatprep.subr.mxu0 %v3847_v1 }
  0x44   : > { %3543 = vmatmul.mubr.f32.vlgmr.msra.gmra.mrb[0].mxu1 %v3971_v13 }
  0x45   : > { %3546 = vmatpush3.msra.mxu1 %v3930_v4  ;;  %3547 = vmatprep.mubr.msk.f32.mxu1 %vm3848_vm1, %v3847_v1 }
  0x46   : > { %3580 = vmatprep.subr.mxu1 %v3847_v1 }
  0x49   : > { %3573 = vmatmul.mubr.f32.vlgmr.msra.gmra.mrb[0].mxu0 %v3997_v25 }
  0x4a   : > { %3576 = vmatpush3.msra.mxu0 %v3940_v6  ;;  %3577 = vmatprep.mubr.msk.f32.mxu0 %vm3848_vm1, %v3847_v1 }
  0x4b   : > { %3640 = vmatprep.subr.mxu0 %v3847_v1 }
  0x4c   : > { %3548 = vmatmul.mubr.f32.vlgmr.msra.gmra.mrb[0].mxu1 %v3971_v13 }
  0x4d   : > { %3581 = vmatpush3.msra.mxu1 %v3930_v4  ;;  %3582 = vmatprep.mubr.msk.f32.mxu1 %vm3848_vm1, %v3847_v1 }
  0x4e   : > { %3585 = vmatprep.subr.mxu1 %v3847_v1 }
  0x50   : > { %3583 = vmatmul.mubr.f32.vlgmr.msra.gmra.mrb[2].mxu1 %v1505_v40 }
  0x51   : > { %3586 = vmatpush3.msra.mxu1 %v615_v26  ;;  %3587 = vmatprep.mubr.msk.f32.mxu1 %vm3848_vm1, %v3847_v1 }
  0x52   : > { %3578 = vmatmul.mubr.f32.vlgmr.msra.gmra.mrb[0].mxu0 %v3997_v25  ;;  %3590 = vmatprep.subr.mxu1 %v3847_v1 }
  0x53   : > { %3642 = vmatprep.mubr.msk.f32.mxu0 %vm3848_vm1, %v3847_v1 }
  0x58   : > { %3588 = vmatmul.mubr.f32.vlgmr.msra.gmra.mrb[2].mxu1 %v1501_v36 }
  0x59   : > { %3591 = vmatpush3.msra.mxu1 %v3960_v8  ;;  %3592 = vmatprep.mubr.msk.f32.mxu1 %vm3848_vm1, %v3847_v1 }
  0x5a   : > { %3595 = vmatprep.subr.mxu1 %v3847_v1 }
  0x60   : > { %3593 = vmatmul.mubr.f32.vlgmr.msra.gmra.mrb[2].mxu1 %v1502_v37 }
  0x61   : > { %3596 = vmatpush3.msra.mxu1 %v3930_v4  ;;  %3597 = vmatprep.mubr.msk.f32.mxu1 %vm3848_vm1, %v3847_v1 }
  0x62   : > { %3600 = vmatprep.subr.mxu1 %v3847_v1 }
  0x68   : > { %3598 = vmatmul.mubr.f32.vlgmr.msra.gmra.mrb[2].mxu1 %v1503_v38 }
  0x69   : > { %3601 = vmatpush3.msra.mxu1 %v3969_v12  ;;  %3602 = vmatprep.mubr.msk.f32.mxu1 %vm3848_vm1, %v3847_v1 }
  0x6a   : > { %3605 = vmatprep.subr.mxu1 %v3847_v1 }
  0x70   : > { %3603 = vmatmul.mubr.f32.vlgmr.msra.gmra.mrb[2].mxu1 %v1501_v36 }
  0x71   : > { %3606 = vmatpush3.msra.mxu1 %v3930_v4  ;;  %3607 = vmatprep.mubr.msk.f32.mxu1 %vm3848_vm1, %v3847_v1  ;;  %v2330_v4 = vld [vmem:[%s4171_s5] sm:$0xff] }
  0x72   : > { %3610 = vmatprep.subr.mxu1 %v3847_v1  ;;  %v2786_v5 = vsel %vm526_vm2, %v2330_v4, 0 }
  0x73   : > { %v2857_v7 = vand.u32 4294901760, %v2786_v5 }
  0x75   : > { %v2858_v9 = vsub.f32 %v2786_v5, %v2857_v7 }
  0x77   : > { %v2859_v11 = vand.u32 4294901760, %v2858_v9 }
  0x78   : > { %3608 = vmatmul.mubr.f32.vlgmr.msra.gmra.mrb[2].mxu1 %v1501_v36 }
  0x79   : > { %3611 = vmatpush3.msra.mxu1 %v3940_v6  ;;  %3612 = vmatprep.mubr.msk.f32.mxu1 %vm3848_vm1, %v3847_v1  ;;  %v2860_v13 = vsub.f32 %v2858_v9, %v2859_v11 }
  0x7a   : > { %3615 = vmatprep.subr.mxu1 %v3847_v1 }
  0x80   : > { %3613 = vmatmul.mubr.f32.vlgmr.msra.gmra.mrb[2].mxu1 %v1954_v46 }
  0x81   : > { %3616 = vmatpush3.msra.mxu1 %v4005_v32  ;;  %3617 = vmatprep.mubr.msk.f32.mxu1 %vm3848_vm1, %v3847_v1 }
  0x82   : > { %3620 = vmatprep.subr.mxu1 %v3847_v1 }
  0x88   : > { %3618 = vmatmul.mubr.f32.vlgmr.msra.gmra.mrb[2].mxu1 %v1950_v42 }
  0x89   : > { %3621 = vmatpush3.msra.mxu1 %v3982_v15  ;;  %3622 = vmatprep.mubr.msk.f32.mxu1 %vm3848_vm1, %v3847_v1  ;;  %v2861_v15 = vand.u32 4294901760, %v2860_v13 }
  0x8a   : > { %3625 = vmatprep.subr.mxu1 %v3847_v1 }
  0x90   : > { %3623 = vmatmul.mubr.f32.vlgmr.msra.gmra.mrb[2].mxu1 %v1951_v43 }
  0x91   : > { %3626 = vmatpush3.msra.mxu1 %v3940_v6  ;;  %3627 = vmatprep.mubr.msk.f32.mxu1 %vm3848_vm1, %v3847_v1 }
  0x92   : > { %3630 = vmatprep.subr.mxu1 %v3847_v1 }
  0x98   : > { %3628 = vmatmul.mubr.f32.vlgmr.msra.gmra.mrb[2].mxu1 %v1952_v44 }
  0x99   : > { %3631 = vmatpush3.msra.mxu1 %v3995_v23  ;;  %3632 = vmatprep.mubr.msk.f32.mxu1 %vm3848_vm1, %v3847_v1 }
  0x9a   : > { %3635 = vmatprep.subr.mxu1 %v3847_v1 }
  0xa0   : > { %3633 = vmatmul.mubr.f32.vlgmr.msra.gmra.mrb[2].mxu1 %v1950_v42 }
  0xa1   : > { %3636 = vmatpush3.msra.mxu1 %v3940_v6  ;;  %3637 = vmatprep.mubr.msk.f32.mxu1 %vm3848_vm1, %v3847_v1 }
  0xa8   : > { %3638 = vmatmul.mubr.f32.vlgmr.msra.gmra.mrb[2].mxu1 %v1950_v42 }
 0x11f   : > { %v976_v47 = vpop.f32.mrb[0].mxu1 }
 0x120   : > { %v3549_v48 = vpop.f32.mrb[1].mxu1 }
 0x125   : > { %v1428_v49 = vpop.f32.mrb[0].mxu0 }
 0x126   : > { %v3700_v50 = vadd.f32 %v1428_v49, %v976_v47  ;;  %v3579_v51 = vpop.f32.mrb[1].mxu0 }
 0x128   : > { %v2789_v6 = vsel %vm530_vm0, %v3700_v50, 0 }
 0x129   : > { %v2792_v8 = vand.u32 4294901760, %v2789_v6 }
 0x12b   : > { %v2869_v10 = vsub.f32 %v2789_v6, %v2792_v8 }
 0x12d   : > { %v2870_v12 = vand.u32 4294901760, %v2869_v10 }
 0x12f   : > { %v2871_v14 = vsub.f32 %v2869_v10, %v2870_v12 }
 0x131   : > { %v2872_v16 = vand.u32 4294901760, %v2871_v14 }
 0x17b   : > { %v2326_v58 = vpop.f32.mrb[2].mxu1 }
 0x17c   : > { %v2337_v59 = vsel %vm530_vm0, %v2326_v58, 0  ;;  %v3639_v60 = vpop.f32.mrb[3].mxu1 }
 0x17d   : > { %v2340_v62 = vand.u32 4294901760, %v2337_v59 }
 0x17f   : > { %v2417_v63 = vsub.f32 %v2337_v59, %v2340_v62  ;;  %3641 = vmatpush3.msra.mxu0 %v2340_v62 }
 0x180   : > { %3643 = vmatmul.mubr.f32.vlgmr.msra.gmra.mrb[2].mxu0 %v2409_v61  ;;  %3645 = vmatprep.subr.mxu0 %v3847_v1 }
 0x181   : > { %v2418_v0 = vand.u32 4294901760, %v2417_v63  ;;  %3647 = vmatprep.mubr.msk.f32.mxu0 %vm3848_vm1, %v3847_v1 }
 0x183   : > { %v2419_v2 = vsub.f32 %v2417_v63, %v2418_v0 }
 0x185   : > { %v2420_v3 = vand.u32 4294901760, %v2419_v2 }
 0x187   : > { %3646 = vmatpush3.msra.mxu0 %v2420_v3 }
 0x188   : > { %3648 = vmatmul.mubr.f32.vlgmr.msra.gmra.mrb[2].mxu0 %v2405_v54  ;;  %3650 = vmatprep.subr.mxu0 %v3847_v1 }
 0x189   : > { %3651 = vmatpush3.msra.mxu0 %v2417_v63  ;;  %3652 = vmatprep.mubr.msk.f32.mxu0 %vm3848_vm1, %v3847_v1 }
 0x18a   : > { %3655 = vmatprep.subr.mxu0 %v3847_v1 }
 0x190   : > { %3653 = vmatmul.mubr.f32.vlgmr.msra.gmra.mrb[2].mxu0 %v2406_v55 }
 0x191   : > { %3656 = vmatpush3.msra.mxu0 %v2340_v62  ;;  %3657 = vmatprep.mubr.msk.f32.mxu0 %vm3848_vm1, %v3847_v1 }
 0x192   : > { %3660 = vmatprep.subr.mxu0 %v3847_v1 }
 0x198   : > { %3658 = vmatmul.mubr.f32.vlgmr.msra.gmra.mrb[2].mxu0 %v2407_v56 }
 0x199   : > { %3661 = vmatpush3.msra.mxu0 %v2418_v0  ;;  %3662 = vmatprep.mubr.msk.f32.mxu0 %vm3848_vm1, %v3847_v1 }
 0x19a   : > { %3665 = vmatprep.subr.mxu0 %v3847_v1 }
 0x1a0   : > { %3663 = vmatmul.mubr.f32.vlgmr.msra.gmra.mrb[2].mxu0 %v2405_v54 }
 0x1a1   : > { %3666 = vmatpush3.msra.mxu0 %v2340_v62  ;;  %3667 = vmatprep.mubr.msk.f32.mxu0 %vm3848_vm1, %v3847_v1 }
 0x1a2   : > { %3670 = vmatprep.subr.mxu0 %v3847_v1 }
 0x1a8   : > { %3668 = vmatmul.mubr.f32.vlgmr.msra.gmra.mrb[2].mxu0 %v2405_v54 }
 0x1a9   : > { %3671 = vmatpush3.msra.mxu0 %v2792_v8  ;;  %3672 = vmatprep.mubr.msk.f32.mxu0 %vm3848_vm1, %v3847_v1 }
 0x1aa   : > { %3675 = vmatprep.subr.mxu0 %v3847_v1 }
 0x1b0   : > { %3673 = vmatmul.mubr.f32.vlgmr.msra.gmra.mrb[2].mxu0 %v2861_v15 }
 0x1b1   : > { %3676 = vmatpush3.msra.mxu0 %v2872_v16  ;;  %3677 = vmatprep.mubr.msk.f32.mxu0 %vm3848_vm1, %v3847_v1 }
 0x1b2   : > { %3680 = vmatprep.subr.mxu0 %v3847_v1 }
 0x1b8   : > { %3678 = vmatmul.mubr.f32.vlgmr.msra.gmra.mrb[2].mxu0 %v2857_v7 }
 0x1b9   : > { %3681 = vmatpush3.msra.mxu0 %v2869_v10  ;;  %3682 = vmatprep.mubr.msk.f32.mxu0 %vm3848_vm1, %v3847_v1 }
 0x1ba   : > { %3685 = vmatprep.subr.mxu0 %v3847_v1 }
 0x1c0   : > { %3683 = vmatmul.mubr.f32.vlgmr.msra.gmra.mrb[2].mxu0 %v2858_v9 }
 0x1c1   : > { %3686 = vmatpush3.msra.mxu0 %v2792_v8  ;;  %3687 = vmatprep.mubr.msk.f32.mxu0 %vm3848_vm1, %v3847_v1 }
 0x1c2   : > { %3690 = vmatprep.subr.mxu0 %v3847_v1 }
 0x1c8   : > { %3688 = vmatmul.mubr.f32.vlgmr.msra.gmra.mrb[2].mxu0 %v2859_v11 }
 0x1c9   : > { %3691 = vmatpush3.msra.mxu0 %v2870_v12  ;;  %3692 = vmatprep.mubr.msk.f32.mxu0 %vm3848_vm1, %v3847_v1 }
 0x1ca   : > { %3695 = vmatprep.subr.mxu0 %v3847_v1 }
 0x1d0   : > { %3693 = vmatmul.mubr.f32.vlgmr.msra.gmra.mrb[2].mxu0 %v2857_v7 }
 0x1d1   : > { %3696 = vmatpush3.msra.mxu0 %v2792_v8  ;;  %3697 = vmatprep.mubr.msk.f32.mxu0 %vm3848_vm1, %v3847_v1 }
 0x1d8   : > { %3698 = vmatmul.mubr.f32.vlgmr.msra.gmra.mrb[2].mxu0 %v2857_v7 }
 0x2ab   : > { %v3233_v17 = vpop.f32.mrb[2].mxu0 }
 0x2ac   : > { %3238 = vst.msk [vmem:[%s514_s8] sm:$0xff] %vm3237_vm3, %v3233_v17  ;;  %v3699_v18 = vpop.f32.mrb[3].mxu0 }
 0x2ad PF: > { %s16_s25 = sadd.s32 1, %s3845_s25   ;;  %s4173_s21 = smov %s3837_s23 }
 0x2ae   : > { %p13_p11 = scmp.ge.s32.totalorder %s16_s25, 34   ;;  %s4174_s22 = smov %s3841_s24 }
 0x2af   : > { %s4175_s23 = smov %s4178_s26  ;;  %s4176_s24 = smov %s4182_s27 }
 0x2b0   :  { %15 = sbr.rel (!%p13_p11) target bundleno = 3 (0x3), region = 85 }

</bundles_post_ra>
